<compile_context>
chip_gen: v7x
topology: tpu7x:2x2x1
jax: 0.10.0
libtpu: 0.0.40
codegen_flags: <defaults>
</compile_context>

<pallas_src>
import jax
import jax.numpy as jnp
from jax import lax
from jax.experimental import pallas as pl
from jax.experimental.pallas import tpu as pltpu


# ----------------------------------------------------------------------------- kernel
def combined_kernel(x_ref, w1_ref, b1_ref, w2_ref, b2_ref, o_ref):
    # first_model: Linear(D_IN -> D_HID_padded).  MXU, f32 accumulation.
    h = jnp.dot(x_ref[...], w1_ref[...],
                preferred_element_type=jnp.float32) + b1_ref[...]

    # F.normalize(h, dim=1): per-row L2 normalize.
    #   h / max(||h||, 1e-12)  ==  h * rsqrt(max(sum(h*h), 1e-24))
    # rsqrt uses the EUP slot; the divide becomes a VPU multiply.  Stays f32.
    ss = jnp.sum(h * h, axis=-1, keepdims=True)
    hn = h * lax.rsqrt(jnp.maximum(ss, 1e-24))

    # second_model: Linear(D_HID_padded -> D_OUT).  Cast the activation operand to
    # the weight dtype (no-op on the f32 path, bf16 on the bf16 path).
    out = jnp.dot(hn.astype(w2_ref.dtype), w2_ref[...],
                  preferred_element_type=jnp.float32) + b2_ref[...]
    o_ref[...] = out.astype(o_ref.dtype)


# ----------------------------------------------------------------------------- helpers
def _round_up(a, m):
    return (a + m - 1) // m * m


def _pick_batch_tile(B, block_b):
    """Batch tile: multiple of 8, <= block_b, and >=2 grid steps when possible."""
    if B <= 8:
        return B                           # full-extent block; single step unavoidable
    tb = max(8, (min(block_b, B) // 8) * 8)
    if tb >= B and B >= 16:
        # Force at least two grid steps so the "parallel" axis can shard across both
        # TensorCores on v7x (no-op on single-TC v5e/v6e).
        tb = _round_up((B + 1) // 2, 8)
    return tb


def _vmem_estimate_bytes(tb, d_in, d_hid_p, d_out, in_bytes):
    """Conservative VMEM footprint: double-buffered tiles + double-buffered weights,
    with lane (128) / sublane (8) padding of every buffer."""
    x_tile = 2 * _round_up(tb, 8) * _round_up(d_in, 128) * in_bytes
    o_tile = 2 * _round_up(tb, 8) * _round_up(d_out, 128) * 4
    w1_buf = 2 * _round_up(d_in, 8) * _round_up(d_hid_p, 128) * in_bytes
    w2_buf = 2 * _round_up(d_hid_p, 8) * _round_up(d_out, 128) * in_bytes
    biases = 2 * 8 * (_round_up(d_hid_p, 128) + _round_up(d_out, 128)) * 4
    return x_tile + o_tile + w1_buf + w2_buf + biases


# ----------------------------------------------------------------------------- wrapper
def combined_forward(x, w1, b1, w2, b2, *, block_b=1024, compute_dtype=jnp.float32):
    """x: (B, D_IN); w1: (D_IN, D_HID); b1: (D_HID,) or (1, D_HID);
    w2: (D_HID, D_OUT); b2: (D_OUT,) or (1, D_OUT).  Weights are (in, out)."""
    B, d_in = x.shape
    d_hid = w1.shape[1]
    d_out = w2.shape[1]
    b1 = b1.reshape(1, d_hid)
    b2 = b2.reshape(1, d_out)

    # --- Hidden-dim lane density: zero-pad D_HID to a multiple of 128 (exact).
    d_hid_p = _round_up(d_hid, 128)
    if d_hid_p != d_hid:
        w1 = jnp.pad(w1, ((0, 0), (0, d_hid_p - d_hid)))
        b1 = jnp.pad(b1, ((0, 0), (0, d_hid_p - d_hid)))
        w2 = jnp.pad(w2, ((0, d_hid_p - d_hid), (0, 0)))
    # D_OUT / D_IN are intentionally NOT padded (zero-waste HBM traffic; see header).

    # --- Optional bf16 MXU inputs; biases / accumulation / normalization stay f32.
    if compute_dtype != jnp.float32:
        x = x.astype(compute_dtype)
        w1 = w1.astype(compute_dtype)
        w2 = w2.astype(compute_dtype)
    b1 = b1.astype(jnp.float32)
    b2 = b2.astype(jnp.float32)
    in_bytes = jnp.dtype(x.dtype).itemsize

    # --- Batch tile + VMEM budget guard (v7x has only 64 MiB physical VMEM).
    tb = _pick_batch_tile(B, block_b)
    budget = 20 * 1024 * 1024
    while tb > 8 and _vmem_estimate_bytes(tb, d_in, d_hid_p, d_out, in_bytes) > budget:
        tb = max(8, ((tb // 2) // 8) * 8)
    est = _vmem_estimate_bytes(tb, d_in, d_hid_p, d_out, in_bytes)
    vmem_limit = int(max(32 * 1024 * 1024, min(64 * 1024 * 1024, 2 * est)))

    grid = (pl.cdiv(B, tb),)

    out = pl.pallas_call(
        combined_kernel,
        out_shape=jax.ShapeDtypeStruct((B, d_out), jnp.float32),
        grid_spec=pltpu.PrefetchScalarGridSpec(
            num_scalar_prefetch=0,
            grid=grid,
            in_specs=[
                pl.BlockSpec((tb, d_in), lambda i: (i, 0)),        # x tile (pipelined)
                pl.BlockSpec((d_in, d_hid_p), lambda i: (0, 0)),   # W1 (VMEM-resident)
                pl.BlockSpec((1, d_hid_p), lambda i: (0, 0)),      # b1 (resident)
                pl.BlockSpec((d_hid_p, d_out), lambda i: (0, 0)),  # W2 (resident)
                pl.BlockSpec((1, d_out), lambda i: (0, 0)),        # b2 (resident)
            ],
            out_specs=pl.BlockSpec((tb, d_out), lambda i: (i, 0)), # zero-waste writeback
        ),
        compiler_params=pltpu.CompilerParams(
            dimension_semantics=("parallel",),    # megacore sharding on v7x
            vmem_limit_bytes=vmem_limit,
        ),
    )(x, w1, b1, w2, b2)

    return out


# ----------------------------------------------------------------------------- reference
def reference_forward(x, w1, b1, w2, b2):
    h = x @ w1 + b1.reshape(1, -1)
    norm = jnp.sqrt(jnp.sum(h * h, axis=1, keepdims=True))
    hn = h / jnp.maximum(norm, 1e-12)
    return hn @ w2 + b2.reshape(1, -1)


# ----------------------------------------------------------------------------- main
if __name__ == "__main__":
    # Small but grid-exercising shapes: two batch tiles of 128 rows each.
    B, D_IN, D_HID, D_OUT = 256, 32, 64, 16

    key = jax.random.PRNGKey(0)
    kx, kw1, kb1, kw2, kb2 = jax.random.split(key, 5)

    x = jax.random.normal(kx, (B, D_IN), dtype=jnp.float32)

    # PyTorch-Linear-like init: U(-1/sqrt(fan_in), 1/sqrt(fan_in)).
    bound1 = 1.0 / (D_IN ** 0.5)
    w1 = jax.random.uniform(kw1, (D_IN, D_HID), jnp.float32, -bound1, bound1)
    b1 = jax.random.uniform(kb1, (1, D_HID), jnp.float32, -bound1, bound1)

    bound2 = 1.0 / (D_HID ** 0.5)
    w2 = jax.random.uniform(kw2, (D_HID, D_OUT), jnp.float32, -bound2, bound2)
    b2 = jax.random.uniform(kb2, (1, D_OUT), jnp.float32, -bound2, bound2)

    ref = reference_forward(x, w1, b1, w2, b2)

    # f32 path (exact semantics of the PyTorch module).
    out = jax.block_until_ready(combined_forward(x, w1, b1, w2, b2))
    assert out.shape == (B, D_OUT), f"bad shape {out.shape}"
    assert jnp.allclose(out, ref, atol=1e-5, rtol=1e-5), "f32 mismatch vs. reference"

    # bf16-input path (f32 accumulation + f32 normalization): looser tolerance.
    out_bf16 = jax.block_until_ready(
        combined_forward(x, w1, b1, w2, b2, compute_dtype=jnp.bfloat16))
    assert out_bf16.shape == (B, D_OUT)
    assert jnp.allclose(out_bf16, ref, atol=3e-2, rtol=3e-2), "bf16 mismatch vs. reference"

    print("KERNEL_OK")
</pallas_src>

<mosaic_0001>
module attributes {stable_mosaic.version = 11 : i64} {
  func.func @combined_kernel(%arg0: i32, %arg1: memref<128x32xf32, #tpu.memory_space<vmem>>, %arg2: memref<32x128xf32, #tpu.memory_space<vmem>>, %arg3: memref<1x128xf32, #tpu.memory_space<vmem>>, %arg4: memref<128x16xf32, #tpu.memory_space<vmem>>, %arg5: memref<1x16xf32, #tpu.memory_space<vmem>>, %arg6: memref<128x16xf32, #tpu.memory_space<vmem>>) attributes {dimension_semantics = [#tpu.dimension_semantics<parallel>], iteration_bounds = array<i64: 2>, scalar_prefetch = 0 : i64, scratch_operands = 0 : i64, tpu.core_type = #tpu.core_type<tc>, window_params = [{transform_indices = @transform_0, window_bounds = array<i64: 128, 32>}, {pipeline_mode = #tpu.pipeline_mode<synchronous>, transform_indices = @transform_1, window_bounds = array<i64: 32, 128>}, {pipeline_mode = #tpu.pipeline_mode<synchronous>, transform_indices = @transform_2, window_bounds = array<i64: 1, 128>}, {pipeline_mode = #tpu.pipeline_mode<synchronous>, transform_indices = @transform_3, window_bounds = array<i64: 128, 16>}, {pipeline_mode = #tpu.pipeline_mode<synchronous>, transform_indices = @transform_4, window_bounds = array<i64: 1, 16>}, {transform_indices = @transform_5, window_bounds = array<i64: 128, 16>}]} {
    %c0 = arith.constant 0 : index
    %c0_0 = arith.constant 0 : index
    %0 = vector.load %arg1[%c0, %c0_0] : memref<128x32xf32, #tpu.memory_space<vmem>>, vector<128x32xf32>
    %c0_1 = arith.constant 0 : index
    %c0_2 = arith.constant 0 : index
    %1 = vector.load %arg2[%c0_1, %c0_2] : memref<32x128xf32, #tpu.memory_space<vmem>>, vector<32x128xf32>
    %cst = arith.constant dense<0.000000e+00> : vector<128x128xf32>
    %2 = tpu.matmul %0, %1, %cst {dimension_numbers = #tpu.dot_dimension_numbers<[1], [0], [0], [1], [0, 0, 1, 1], [], []>} : vector<128x32xf32>, vector<32x128xf32>, vector<128x128xf32> -> vector<128x128xf32>
    %c0_3 = arith.constant 0 : index
    %c0_4 = arith.constant 0 : index
    %3 = vector.load %arg3[%c0_3, %c0_4] : memref<1x128xf32, #tpu.memory_space<vmem>>, vector<1x128xf32>
    %4 = vector.broadcast %3 : vector<1x128xf32> to vector<128x128xf32>
    %5 = arith.addf %2, %4 : vector<128x128xf32>
    %6 = arith.mulf %5, %5 : vector<128x128xf32>
    %cst_5 = arith.constant dense<0.000000e+00> : vector<128xf32>
    %7 = vector.multi_reduction <add>, %6, %cst_5 [1] : vector<128x128xf32> to vector<128xf32>
    %8 = vector.shape_cast %7 : vector<128xf32> to vector<128x1xf32>
    %cst_6 = arith.constant 1.000000e-24 : f32
    %9 = vector.broadcast %cst_6 : f32 to vector<128x1xf32>
    %10 = arith.maximumf %8, %9 : vector<128x1xf32>
    %11 = math.rsqrt %10 : vector<128x1xf32>
    %12 = vector.broadcast %11 : vector<128x1xf32> to vector<128x128xf32>
    %13 = arith.mulf %5, %12 : vector<128x128xf32>
    %c0_7 = arith.constant 0 : index
    %c0_8 = arith.constant 0 : index
    %14 = vector.load %arg4[%c0_7, %c0_8] : memref<128x16xf32, #tpu.memory_space<vmem>>, vector<128x16xf32>
    %cst_9 = arith.constant dense<0.000000e+00> : vector<128x16xf32>
    %15 = tpu.matmul %13, %14, %cst_9 {dimension_numbers = #tpu.dot_dimension_numbers<[1], [0], [0], [1], [0, 0, 1, 1], [], []>} : vector<128x128xf32>, vector<128x16xf32>, vector<128x16xf32> -> vector<128x16xf32>
    %c0_10 = arith.constant 0 : index
    %c0_11 = arith.constant 0 : index
    %16 = vector.load %arg5[%c0_10, %c0_11] : memref<1x16xf32, #tpu.memory_space<vmem>>, vector<1x16xf32>
    %17 = vector.broadcast %16 : vector<1x16xf32> to vector<128x16xf32>
    %18 = arith.addf %15, %17 : vector<128x16xf32>
    %c0_12 = arith.constant 0 : index
    %c0_13 = arith.constant 0 : index
    %19 = vector.load %arg6[%c0_12, %c0_13] : memref<128x16xf32, #tpu.memory_space<vmem>>, vector<128x16xf32>
    tpu.vector_store %arg6[%c0_12, %c0_13], %18 {strides = array<i32>} : memref<128x16xf32, #tpu.memory_space<vmem>>, vector<128x16xf32>,
    return
  }
  func.func @transform_0(%arg0: i32) -> (i32, i32) {
    %c0_i32 = arith.constant 0 : i32
    %c0_i32_0 = arith.constant 0 : i32
    return %arg0, %c0_i32 : i32, i32
  }
  func.func @transform_1(%arg0: i32) -> (i32, i32) {
    %c0_i32 = arith.constant 0 : i32
    %c0_i32_0 = arith.constant 0 : i32
    %c0_i32_1 = arith.constant 0 : i32
    return %c0_i32, %c0_i32_0 : i32, i32
  }
  func.func @transform_2(%arg0: i32) -> (i32, i32) {
    %c0_i32 = arith.constant 0 : i32
    %c0_i32_0 = arith.constant 0 : i32
    %c0_i32_1 = arith.constant 0 : i32
    return %c0_i32, %c0_i32_0 : i32, i32
  }
  func.func @transform_3(%arg0: i32) -> (i32, i32) {
    %c0_i32 = arith.constant 0 : i32
    %c0_i32_0 = arith.constant 0 : i32
    %c0_i32_1 = arith.constant 0 : i32
    return %c0_i32, %c0_i32_0 : i32, i32
  }
  func.func @transform_4(%arg0: i32) -> (i32, i32) {
    %c0_i32 = arith.constant 0 : i32
    %c0_i32_0 = arith.constant 0 : i32
    %c0_i32_1 = arith.constant 0 : i32
    return %c0_i32, %c0_i32_0 : i32, i32
  }
  func.func @transform_5(%arg0: i32) -> (i32, i32) {
    %c0_i32 = arith.constant 0 : i32
    %c0_i32_0 = arith.constant 0 : i32
    return %arg0, %c0_i32 : i32, i32
  }
}

</mosaic_0001>

<bundles_post_ra>
// kernel: tpu_custom_call.1
= control target key start
LH: loop header
LB: loop body
LE: loop exit
PB: predicated region body
PF: predicated region fallthrough
CT: control target
= control target key end

     0   :  { %s1089_s18 = smov 0   ;;  %s1348_s0 = inlined_call_operand.vmem [shape: f32[256,32], index: 0, kind: input, shape index: {}]   ;;  %s1349_s1 = inlined_call_operand.vmem [shape: f32[32,128], index: 1, kind: input, shape index: {}]   ;;  %s1350_s2 = inlined_call_operand.vmem [shape: f32[1,128], index: 2, kind: input, shape index: {}]   ;;  %s1351_s3 = inlined_call_operand.vmem [shape: f32[128,16], index: 3, kind: input, shape index: {}]   ;;  %s1352_s4 = inlined_call_operand.vmem [shape: f32[1,16], index: 4, kind: input, shape index: {}]   ;;  %s1353_s5 = inlined_call_operand.vmem [shape: f32[256,16], index: 5, kind: output, shape index: {}]  }
   0x1 LB: > { %s786_s19 = sadd.s32 4294967295, %s1057_s18   ;;  %p790_p0 = scmp.ge.s32.totalorder %s1057_s18, 1  ;;  %s1057_s18 = sphi %s1089_s18, %s15_s18  }
   0x2   : > { %p188_p1 = scmp.lt.s32.totalorder %s1057_s18, 3 }
   0x4   : > { %p189_p2 = pnand %p790_p0, %p188_p1 }
   0x5   : > { %v244_v0 = vld [vmem:[%s1349_s1] sm:$0xff] (!%p189_p2)  ;;  %v245_v1 = vld [vmem:[%s1349_s1 + $0x8] sm:$0xff] (!%p189_p2)  ;;  %v246_v2 = vld [vmem:[%s1349_s1 + $0x10] sm:$0xff] (!%p189_p2)  ;;  %s791_s26 = sshll.u32 (!%p189_p2), %s786_s19, 4  ;;  %vm255_vm0 = vcmask (!%p189_p2), 261120   ;;  %vm713_vm1 = vcmask (!%p189_p2), 130048  }
   0x6   : > { %192 = sbr.rel (%p189_p2) target bundleno = 651 (0x28b), region = 40  ;;  %v955_v3 = vpack.c.bf16 (!%p189_p2), %v245_v1, %v244_v0  ;;  %v247_v4 = vld [vmem:[%s1349_s1 + $0x18] sm:$0xff] (!%p189_p2)  ;;  %p217_p3 = scmp.lt.s32.totalorder (!%p189_p2), %s791_s26, 31  ;;  %v545_v22 = vld [vmem:[%s1351_s3] sm:$0xff] (!%p189_p2)  ;;  %v546_v23 = vld [vmem:[%s1351_s3 + $0x8] sm:$0xff] (!%p189_p2) }
   0x7   : > { %v959_v5 = vpack.c.bf16 (!%p189_p2), %v247_v4, %v246_v2  ;;  %v963_v24 = vpack.c.bf16 (!%p189_p2), %v546_v23, %v545_v22  ;;  %v1160_v25 = vld [vmem:[%s1350_s2] ss:$0 sm:$0xff] (!%p189_p2)  ;;  %v547_v47 = vld [vmem:[%s1351_s3 + $0x10] sm:$0xff] (!%p189_p2)  ;;  %v548_v48 = vld [vmem:[%s1351_s3 + $0x18] sm:$0xff] (!%p189_p2) }
   0x8   : > { %956 = vmatprep.subr.bf16.mxu0 (!%p189_p2), %v955_v3  ;;  %v967_v51 = vpack.c.bf16 (!%p189_p2), %v548_v48, %v547_v47  ;;  %v549_v53 = vld [vmem:[%s1351_s3 + $0x20] sm:$0xff] (!%p189_p2)  ;;  %v550_v54 = vld [vmem:[%s1351_s3 + $0x28] sm:$0xff] (!%p189_p2)  ;;  %v551_v1 = vld [vmem:[%s1351_s3 + $0x30] sm:$0xff] (!%p189_p2) }
   0x9   : > { %958 = vmatpush3.bf16.msra.mxu0 (!%p189_p2), %v955_v3  ;;  %995 = vmatprep.subr.bf16.mxu1 (!%p189_p2), %v963_v24  ;;  %v971_v57 = vpack.c.bf16 (!%p189_p2), %v550_v54, %v549_v53  ;;  %v552_v2 = vld [vmem:[%s1351_s3 + $0x38] sm:$0xff] (!%p189_p2)  ;;  %v557_v23 = vld [vmem:[%s1351_s3 + $0x60] sm:$0xff] (!%p189_p2) }
   0xa   : > { %960 = vmatprep.subr.bf16.mxu0 (!%p189_p2), %v959_v5  ;;  %1003 = vmatpush3.bf16.msra.mxu1 (!%p189_p2), %v963_v24 }
   0xb   : > { %996 = vmatprep.subr.bf16.mxu1 (!%p189_p2), %v967_v51 }
   0xd   : > { %s1355_s26 = smov (!%p217_p3, %s791_s26), 31  ;;  %962 = vmatpush3.bf16.msra.mxu0 %v959_v5  ;;  %v975_v5 = vpack.c.bf16 %v552_v2, %v551_v1 }
   0xe   : > { %s792_s29 = sshll.u32 %s1355_s26, 3  ;;  %964 = vmatprep.subr.bf16.mxu0 %v963_v24  ;;  %1004 = vmatpush3.bf16.msra.mxu1 %v967_v51 }
   0xf   : > { %s1117_s7 = scalar_lea.vmem %s1348_s0, %s792_s29  ;;  %997 = vmatprep.subr.bf16.mxu1 %v971_v57  ;;  %s1311_s25 = scalar_lea.vmem %s1353_s5, %s792_s29 }
  0x10   : > { %v228_v6 = vld [vmem:[%s1117_s7] sm:$0xff]  ;;  %v229_v7 = vld [vmem:[%s1117_s7 + $0x8] sm:$0xff]  ;;  %v230_v8 = vld [vmem:[%s1117_s7 + $0x10] sm:$0xff] }
  0x11   : > { %875 = vmatprep.mubr.msk.f32.mxu0 %vm255_vm0, %v228_v6  ;;  %v231_v9 = vld [vmem:[%s1117_s7 + $0x18] sm:$0xff]  ;;  %v232_v10 = vld [vmem:[%s1117_s7 + $0x20] sm:$0xff]  ;;  %v233_v11 = vld [vmem:[%s1117_s7 + $0x28] sm:$0xff] }
  0x12   : > { %876 = vmatmul.mubr.msk.f32.vlgmr.msra.gmra.mrb[0].mxu0 %vm255_vm0, %v229_v7  ;;  %v234_v12 = vld [vmem:[%s1117_s7 + $0x30] sm:$0xff]  ;;  %v235_v13 = vld [vmem:[%s1117_s7 + $0x38] sm:$0xff]  ;;  %v236_v14 = vld [vmem:[%s1117_s7 + $0x40] sm:$0xff]  ;;  %1005 = vmatpush3.bf16.msra.mxu1 %v971_v57 }
  0x13   : > { %878 = vmatprep.mubr.msk.f32.mxu0 %vm255_vm0, %v230_v8  ;;  %v237_v15 = vld [vmem:[%s1117_s7 + $0x48] sm:$0xff]  ;;  %v238_v16 = vld [vmem:[%s1117_s7 + $0x50] sm:$0xff]  ;;  %v239_v17 = vld [vmem:[%s1117_s7 + $0x58] sm:$0xff]  ;;  %966 = vmatpush3.bf16.msra.mxu0 %v963_v24 }
  0x14   : > { %v240_v18 = vld [vmem:[%s1117_s7 + $0x60] sm:$0xff]  ;;  %v241_v19 = vld [vmem:[%s1117_s7 + $0x68] sm:$0xff]  ;;  %v242_v20 = vld [vmem:[%s1117_s7 + $0x70] sm:$0xff]  ;;  %968 = vmatprep.subr.bf16.mxu0 %v967_v51  ;;  %998 = vmatprep.subr.bf16.mxu1 %v975_v5 }
  0x15   : > { %v243_v21 = vld [vmem:[%s1117_s7 + $0x78] sm:$0xff]  ;;  %v558_v24 = vld [vmem:[%s1351_s3 + $0x68] sm:$0xff] }
  0x16   : > { %879 = vmatmul.mubr.msk.f32.gmra.mrb[2].mxu0 %vm255_vm0, %v231_v9  ;;  %1006 = vmatpush3.bf16.msra.mxu1 %v975_v5 }
  0x17   : > { %881 = vmatprep.mubr.msk.f32.mxu0 %vm255_vm0, %v232_v10  ;;  %970 = vmatpush3.bf16.msra.mxu0 %v967_v51  ;;  %v553_v10 = vld [vmem:[%s1351_s3 + $0x40] sm:$0xff] }
  0x18   : > { %972 = vmatprep.subr.bf16.mxu0 %v971_v57 }
  0x1a   : > { %882 = vmatmul.mubr.msk.f32.gmra.mrb[4].mxu0 %vm255_vm0, %v233_v11  ;;  %v554_v11 = vld [vmem:[%s1351_s3 + $0x48] sm:$0xff] }
  0x1b   : > { %884 = vmatprep.mubr.msk.f32.mxu0 %vm255_vm0, %v234_v12  ;;  %974 = vmatpush3.bf16.msra.mxu0 %v971_v57  ;;  %v979_v12 = vpack.c.bf16 %v554_v11, %v553_v10 }
  0x1c   : > { %976 = vmatprep.subr.bf16.mxu0 %v975_v5 }
  0x1d   : > { %999 = vmatprep.subr.bf16.mxu1 %v979_v12 }
  0x1e   : > { %885 = vmatmul.mubr.msk.f32.gmra.mrb[6].mxu0 %vm255_vm0, %v235_v13  ;;  %1007 = vmatpush3.bf16.msra.mxu1 %v979_v12 }
  0x1f   : > { %887 = vmatprep.mubr.msk.f32.mxu0 %vm255_vm0, %v236_v14  ;;  %978 = vmatpush3.bf16.msra.mxu0 %v975_v5 }
  0x20   : > { %980 = vmatprep.subr.bf16.mxu0 %v979_v12 }
  0x22   : > { %888 = vmatmul.mubr.msk.f32.gmra.mrb[8].mxu0 %vm255_vm0, %v237_v15 }
  0x23   : > { %890 = vmatprep.mubr.msk.f32.mxu0 %vm255_vm0, %v238_v16  ;;  %982 = vmatpush3.bf16.msra.mxu0 %v979_v12 }
  0x26   : > { %891 = vmatmul.mubr.msk.f32.gmra.mrb[10].mxu0 %vm255_vm0, %v239_v17  ;;  %v555_v17 = vld [vmem:[%s1351_s3 + $0x50] sm:$0xff] }
  0x27   : > { %893 = vmatprep.mubr.msk.f32.mxu0 %vm255_vm0, %v240_v18  ;;  %v556_v18 = vld [vmem:[%s1351_s3 + $0x58] sm:$0xff] }
  0x2a   : > { %894 = vmatmul.mubr.msk.f32.gmra.mrb[12].mxu0 %vm255_vm0, %v241_v19  ;;  %v983_v19 = vpack.c.bf16 %v556_v18, %v555_v17 }
  0x2b   : > { %896 = vmatprep.mubr.msk.f32.mxu0 %vm255_vm0, %v242_v20 }
  0x2c   : > { %1000 = vmatprep.subr.bf16.mxu1 %v983_v19  ;;  %984 = vmatprep.subr.bf16.mxu0 %v983_v19 }
  0x2d   : > { %1008 = vmatpush3.bf16.msra.mxu1 %v983_v19  ;;  %986 = vmatpush3.bf16.msra.mxu0 %v983_v19 }
  0x2e   : > { %897 = vmatmul.mubr.msk.f32.gmra.mrb[14].mxu0 %vm255_vm0, %v243_v21 }
  0xe5   : > { %v877_v26 = vpop.f32.mrb[0].mxu0 }
  0xe6   : > { %v370_v27 = vpop.f32.mrb[1].mxu0  ;;  %v1181_v42 = vadd.f32 %v877_v26, %v1160_v25  ;;  %v987_v26 = vpack.c.bf16 %v558_v24, %v557_v23 }
  0xe7   : > { %v1163_v28 = vadd.f32 %v1160_v25, %v370_v27 }
  0xe8   : > { %v450_v52 = vmul.f32 %v1181_v42, %v1181_v42  ;;  %1001 = vmatprep.subr.bf16.mxu1 %v987_v26  ;;  %988 = vmatprep.subr.bf16.mxu0 %v987_v26 }
  0xe9   : > { %v880_v29 = vpop.f32.mrb[2].mxu0  ;;  %v449_v30 = vmul.f32 %v1163_v28, %v1163_v28  ;;  %1009 = vmatpush3.bf16.msra.mxu1 %v987_v26  ;;  %990 = vmatpush3.bf16.msra.mxu0 %v987_v26 }
  0xea   : > { %v380_v31 = vpop.f32.mrb[3].mxu0  ;;  %v1215_v61 = vadd.f32 %v880_v29, %v1160_v25  ;;  %v559_v29 = vld [vmem:[%s1351_s3 + $0x70] sm:$0xff] }
  0xeb   : > { %465 = vadd.xlane.f32.xlu0 %v449_v30  ;;  %v1208_v55 = vadd.f32 %v1160_v25, %v380_v31  ;;  %v560_v30 = vld [vmem:[%s1351_s3 + $0x78] sm:$0xff] }
  0xec   : > { %v452_v8 = vmul.f32 %v1215_v61, %v1215_v61  ;;  %v991_v31 = vpack.c.bf16 %v560_v30, %v559_v29 }
  0xed   : > { %v1167_v32 = vpop.f32.mrb[4].mxu0  ;;  %v451_v63 = vmul.f32 %v1208_v55, %v1208_v55 }
  0xee   : > { %v390_v33 = vpop.f32.mrb[5].mxu0  ;;  %v1248_v13 = vadd.f32 %v1167_v32, %v1160_v25  ;;  %1002 = vmatprep.subr.bf16.mxu1 %v991_v31  ;;  %992 = vmatprep.subr.bf16.mxu0 %v991_v31 }
  0xef   : > { %v1232_v6 = vadd.f32 %v1160_v25, %v390_v33  ;;  %1010 = vmatpush3.bf16.msra.mxu1 %v991_v31  ;;  %994 = vmatpush3.bf16.msra.mxu0 %v991_v31 }
  0xf0   : > { %v454_v21 = vmul.f32 %v1248_v13, %v1248_v13 }
  0xf1   : > { %v886_v34 = vpop.f32.mrb[6].mxu0  ;;  %v453_v15 = vmul.f32 %v1232_v6, %v1232_v6 }
  0xf2   : > { %v1170_v35 = vadd.f32 %v886_v34, %v1160_v25  ;;  %v400_v36 = vpop.f32.mrb[7].mxu0 }
  0xf3   : > { %v1173_v37 = vadd.f32 %v1160_v25, %v400_v36 }
  0xf4   : > { %v456_v38 = vmul.f32 %v1170_v35, %v1170_v35 }
  0xf5   : > { %v889_v39 = vpop.f32.mrb[8].mxu0  ;;  %v455_v45 = vmul.f32 %v1173_v37, %v1173_v37 }
  0xf6   : > { %v1178_v40 = vadd.f32 %v889_v39, %v1160_v25  ;;  %v410_v41 = vpop.f32.mrb[9].mxu0  ;;  %479 = vadd.xlane.f32.xlu0 %v456_v38 }
  0xf7   : > { %v1184_v43 = vadd.f32 %v1160_v25, %v410_v41 }
  0xf8   : > { %v458_v44 = vmul.f32 %v1178_v40, %v1178_v40 }
  0xf9   : > { %v892_v46 = vpop.f32.mrb[10].mxu0  ;;  %v457_v56 = vmul.f32 %v1184_v43, %v1184_v43 }
  0xfa   : > { %483 = vadd.xlane.f32.xlu1 %v458_v44  ;;  %477 = vadd.xlane.f32.xlu0 %v455_v45  ;;  %v1197_v49 = vadd.f32 %v892_v46, %v1160_v25  ;;  %v420_v50 = vpop.f32.mrb[11].mxu0 }
  0xfb   : > { %v1218_v62 = vadd.f32 %v1160_v25, %v420_v50 }
  0xfc   : > { %v460_v59 = vmul.f32 %v1197_v49, %v1197_v49 }
  0xfd   : > { %v895_v58 = vpop.f32.mrb[12].mxu0  ;;  %v459_v7 = vmul.f32 %v1218_v62, %v1218_v62 }
  0xfe   : > { %481 = vadd.xlane.f32.xlu1 %v457_v56  ;;  %467 = vadd.xlane.f32.xlu0 %v450_v52  ;;  %v430_v60 = vpop.f32.mrb[13].mxu0  ;;  %v1229_v3 = vadd.f32 %v895_v58, %v1160_v25 }
  0xff   : > { %v1251_v14 = vadd.f32 %v1160_v25, %v430_v60 }
 0x100   : > { %v462_v9 = vmul.f32 %v1229_v3, %v1229_v3 }
 0x101   : > { %v898_v0 = vpop.f32.mrb[14].mxu0  ;;  %v461_v20 = vmul.f32 %v1251_v14, %v1251_v14 }
 0x102   : > { %487 = vadd.xlane.f32.xlu1 %v460_v59  ;;  %469 = vadd.xlane.f32.xlu0 %v451_v63  ;;  %v440_v4 = vpop.f32.mrb[15].mxu0  ;;  %v1277_v27 = vadd.f32 %v898_v0, %v1160_v25 }
 0x103   : > { %v1256_v16 = vadd.f32 %v1160_v25, %v440_v4 }
 0x104   : > { %v464_v32 = vmul.f32 %v1277_v27, %v1277_v27 }
 0x105   : > { %v463_v22 = vmul.f32 %v1256_v16, %v1256_v16 }
 0x106   : > { %485 = vadd.xlane.f32.xlu1 %v459_v7  ;;  %471 = vadd.xlane.f32.xlu0 %v452_v8 }
 0x10a   : > { %491 = vadd.xlane.f32.xlu1 %v462_v9  ;;  %473 = vadd.xlane.f32.xlu0 %v453_v15 }
 0x10e   : > { %489 = vadd.xlane.f32.xlu1 %v461_v20  ;;  %475 = vadd.xlane.f32.xlu0 %v454_v21 }
 0x112   : > { %493 = vadd.xlane.f32.xlu1 %v463_v22 }
 0x116   : > { %495 = vadd.xlane.f32.xlu1 %v464_v32 }
 0x178   : > { %v466_v25 = vpop.xlane.xlu0 %465 }
 0x179   : > { %v497_v33 = vmax.f32 %v466_v25, 1e-24 }
 0x17b   : > { %1019 = vrsqrt.f32 %v497_v33 }
 0x183   : > { %v480_v34 = vpop.xlane.xlu0 %479 }
 0x184   : > { %v504_v38 = vmax.f32 %v480_v34, 1e-24 }
 0x185   : > { %v1020_v36 = vpop.eup %1019 }
 0x186   : > { %v529_v39 = vmul.f32 %v1020_v36, %v1163_v28  ;;  %1021 = vrsqrt.f32 %v504_v38 }
 0x187   : > { %v484_v41 = vpop.xlane.xlu1 %483  ;;  %v478_v44 = vpop.xlane.xlu0 %477 }
 0x188   : > { %v503_v45 = vmax.f32 %v478_v44, 1e-24  ;;  %931 = vmatprep.mubr.f32.mxu0 %v529_v39  ;;  %v506_v46 = vmax.f32 %v484_v41, 1e-24  ;;  %v812_v39 = vld [vmem:[%s1352_s4] ss:$0 sm:$0xff] }
 0x18a   : > { %1023 = vrsqrt.f32 %v503_v45 }
 0x18b   : > { %v482_v47 = vpop.xlane.xlu1 %481  ;;  %v468_v48 = vpop.xlane.xlu0 %467  ;;  %1025 = vrsqrt.f32 %v506_v46 }
 0x18c   : > { %v505_v50 = vmax.f32 %v482_v47, 1e-24  ;;  %v498_v51 = vmax.f32 %v468_v48, 1e-24 }
 0x18e   : > { %1027 = vrsqrt.f32 %v505_v50 }
 0x18f   : > { %1029 = vrsqrt.f32 %v498_v51  ;;  %v488_v52 = vpop.xlane.xlu1 %487  ;;  %v470_v53 = vpop.xlane.xlu0 %469 }
 0x190   : > { %v499_v54 = vmax.f32 %v470_v53, 1e-24  ;;  %v508_v56 = vmax.f32 %v488_v52, 1e-24  ;;  %v1022_v58 = vpop.eup %1021 }
 0x191   : > { %v536_v5 = vmul.f32 %v1022_v58, %v1170_v35 }
 0x192   : > { %1031 = vrsqrt.f32 %v499_v54 }
 0x193   : > { %v486_v28 = vpop.xlane.xlu1 %485  ;;  %v472_v57 = vpop.xlane.xlu0 %471  ;;  %1033 = vrsqrt.f32 %v508_v56 }
 0x194   : > { %v507_v59 = vmax.f32 %v486_v28, 1e-24  ;;  %v500_v60 = vmax.f32 %v472_v57, 1e-24  ;;  %v1024_v63 = vpop.eup %1023 }
 0x195   : > { %v535_v0 = vmul.f32 %v1024_v63, %v1173_v37  ;;  %v1026_v1 = vpop.eup %1025 }
 0x196   : > { %1035 = vrsqrt.f32 %v507_v59  ;;  %v538_v17 = vmul.f32 %v1026_v1, %v1178_v40 }
 0x197   : > { %1037 = vrsqrt.f32 %v500_v60  ;;  %v492_v2 = vpop.xlane.xlu1 %491  ;;  %v474_v4 = vpop.xlane.xlu0 %473  ;;  %940 = vmatprep.mubr.f32.mxu1 %v535_v0 }
 0x198   : > { %v1028_v7 = vpop.eup %1027  ;;  %v501_v8 = vmax.f32 %v474_v4, 1e-24  ;;  %v510_v10 = vmax.f32 %v492_v2, 1e-24  ;;  %941 = vmatmul.mubr.f32.vlgmr.msra.gmra.mrb[0].mxu1 %v536_v5 }
 0x199   : > { %v1030_v9 = vpop.eup %1029  ;;  %v537_v11 = vmul.f32 %v1028_v7, %v1184_v43 }
 0x19a   : > { %v530_v12 = vmul.f32 %v1030_v9, %v1181_v42  ;;  %1039 = vrsqrt.f32 %v501_v8 }
 0x19b   : > { %v490_v15 = vpop.xlane.xlu1 %489  ;;  %943 = vmatprep.mubr.f32.mxu1 %v537_v11  ;;  %v476_v37 = vpop.xlane.xlu0 %475  ;;  %1041 = vrsqrt.f32 %v510_v10 }
 0x19c   : > { %v509_v18 = vmax.f32 %v490_v15, 1e-24  ;;  %932 = vmatmul.mubr.f32.vlgmr.msra.gmra.mrb[16].mxu0 %v530_v12  ;;  %v502_v19 = vmax.f32 %v476_v37, 1e-24  ;;  %v1032_v35 = vpop.eup %1031  ;;  %944 = vmatmul.mubr.f32.gmra.mrb[2].mxu1 %v538_v17 }
 0x19d   : > { %v531_v20 = vmul.f32 %v1032_v35, %v1208_v55  ;;  %v1034_v21 = vpop.eup %1033 }
 0x19e   : > { %1043 = vrsqrt.f32 %v509_v18  ;;  %v540_v26 = vmul.f32 %v1034_v21, %v1197_v49 }
 0x19f   : > { %1045 = vrsqrt.f32 %v502_v19  ;;  %v494_v43 = vpop.xlane.xlu1 %493  ;;  %934 = vmatprep.mubr.f32.mxu0 %v531_v20 }
 0x1a0   : > { %v1036_v22 = vpop.eup %1035  ;;  %v511_v42 = vmax.f32 %v494_v43, 1e-24 }
 0x1a1   : > { %v1038_v23 = vpop.eup %1037  ;;  %v539_v24 = vmul.f32 %v1036_v22, %v1218_v62 }
 0x1a2   : > { %1047 = vrsqrt.f32 %v511_v42  ;;  %v532_v40 = vmul.f32 %v1038_v23, %v1215_v61 }
 0x1a3   : > { %v496_v29 = vpop.xlane.xlu1 %495  ;;  %946 = vmatprep.mubr.f32.mxu1 %v539_v24 }
 0x1a4   : > { %v512_v30 = vmax.f32 %v496_v29, 1e-24  ;;  %935 = vmatmul.mubr.f32.gmra.mrb[18].mxu0 %v532_v40  ;;  %947 = vmatmul.mubr.f32.gmra.mrb[4].mxu1 %v540_v26  ;;  %v1040_v55 = vpop.eup %1039 }
 0x1a5   : > { %v533_v31 = vmul.f32 %v1040_v55, %v1232_v6  ;;  %v1042_v32 = vpop.eup %1041 }
 0x1a6   : > { %1049 = vrsqrt.f32 %v512_v30  ;;  %v542_v49 = vmul.f32 %v1042_v32, %v1229_v3 }
 0x1a7   : > { %937 = vmatprep.mubr.f32.mxu0 %v533_v31 }
 0x1a8   : > { %v1044_v25 = vpop.eup %1043 }
 0x1a9   : > { %v1046_v33 = vpop.eup %1045  ;;  %v541_v62 = vmul.f32 %v1044_v25, %v1251_v14 }
 0x1aa   : > { %v534_v61 = vmul.f32 %v1046_v33, %v1248_v13 }
 0x1ab   : > { %949 = vmatprep.mubr.f32.mxu1 %v541_v62 }
 0x1ac   : > { %v1048_v34 = vpop.eup %1047  ;;  %938 = vmatmul.mubr.f32.gmra.mrb[20].mxu0 %v534_v61  ;;  %950 = vmatmul.mubr.f32.gmra.mrb[6].mxu1 %v542_v49 }
 0x1ad   : > { %v543_v36 = vmul.f32 %v1048_v34, %v1256_v16 }
 0x1af   : > { %952 = vmatprep.mubr.f32.mxu1 %v543_v36 }
 0x1b0   : > { %v1050_v38 = vpop.eup %1049 }
 0x1b1   : > { %v544_v6 = vmul.f32 %v1050_v38, %v1277_v27 }
 0x1b3   : > { %953 = vmatmul.mubr.f32.gmra.mrb[8].mxu1 %v544_v6 }
 0x26b   : > { %v942_v3 = vpop.f32.mrb[0].mxu1 }
 0x26c   : > { %v670_v13 = vadd.f32 %v942_v3, %v812_v39  ;;  %v664_v14 = vpop.f32.mrb[1].mxu1 }
 0x26d   : > { %v665_v16 = vadd.f32 %v812_v39, %v664_v14 }
 0x26e   : > { %721 = vst.msk [vmem:[%s1311_s25 + $0x38] sm:$0xff] %vm713_vm1, %v670_v13 }
 0x26f   : > { %v933_v27 = vpop.f32.mrb[16].mxu0  ;;  %720 = vst.msk [vmem:[%s1311_s25 + $0x30] sm:$0xff] %vm713_vm1, %v665_v16  ;;  %v945_v45 = vpop.f32.mrb[2].mxu1 }
 0x270   : > { %v640_v41 = vadd.f32 %v933_v27, %v812_v39  ;;  %v634_v44 = vpop.f32.mrb[17].mxu0  ;;  %v680_v47 = vadd.f32 %v945_v45, %v812_v39  ;;  %v674_v48 = vpop.f32.mrb[3].mxu1 }
 0x271   : > { %v635_v46 = vadd.f32 %v812_v39, %v634_v44  ;;  %v675_v50 = vadd.f32 %v812_v39, %v674_v48 }
 0x272   : > { %715 = vst.msk [vmem:[%s1311_s25 + $0x8] sm:$0xff] %vm713_vm1, %v640_v41  ;;  %723 = vst.msk [vmem:[%s1311_s25 + $0x48] sm:$0xff] %vm713_vm1, %v680_v47 }
 0x273   : > { %714 = vst.msk [vmem:[%s1311_s25] sm:$0xff] %vm713_vm1, %v635_v46  ;;  %722 = vst.msk [vmem:[%s1311_s25 + $0x40] sm:$0xff] %vm713_vm1, %v675_v50 }
 0x277   : > { %v936_v51 = vpop.f32.mrb[18].mxu0  ;;  %v948_v52 = vpop.f32.mrb[4].mxu1 }
 0x278   : > { %v650_v53 = vadd.f32 %v936_v51, %v812_v39  ;;  %v644_v54 = vpop.f32.mrb[19].mxu0  ;;  %v690_v56 = vadd.f32 %v948_v52, %v812_v39  ;;  %v684_v28 = vpop.f32.mrb[5].mxu1 }
 0x279   : > { %v645_v57 = vadd.f32 %v812_v39, %v644_v54  ;;  %v685_v58 = vadd.f32 %v812_v39, %v684_v28 }
 0x27a   : > { %717 = vst.msk [vmem:[%s1311_s25 + $0x18] sm:$0xff] %vm713_vm1, %v650_v53  ;;  %725 = vst.msk [vmem:[%s1311_s25 + $0x58] sm:$0xff] %vm713_vm1, %v690_v56 }
 0x27b   : > { %716 = vst.msk [vmem:[%s1311_s25 + $0x10] sm:$0xff] %vm713_vm1, %v645_v57  ;;  %724 = vst.msk [vmem:[%s1311_s25 + $0x50] sm:$0xff] %vm713_vm1, %v685_v58 }
 0x27f   : > { %v939_v59 = vpop.f32.mrb[20].mxu0  ;;  %v951_v60 = vpop.f32.mrb[6].mxu1 }
 0x280   : > { %v660_v63 = vadd.f32 %v939_v59, %v812_v39  ;;  %v654_v0 = vpop.f32.mrb[21].mxu0  ;;  %v700_v1 = vadd.f32 %v951_v60, %v812_v39  ;;  %v694_v2 = vpop.f32.mrb[7].mxu1 }
 0x281   : > { %v655_v4 = vadd.f32 %v812_v39, %v654_v0  ;;  %v695_v5 = vadd.f32 %v812_v39, %v694_v2 }
 0x282   : > { %719 = vst.msk [vmem:[%s1311_s25 + $0x28] sm:$0xff] %vm713_vm1, %v660_v63  ;;  %727 = vst.msk [vmem:[%s1311_s25 + $0x68] sm:$0xff] %vm713_vm1, %v700_v1 }
 0x283   : > { %718 = vst.msk [vmem:[%s1311_s25 + $0x20] sm:$0xff] %vm713_vm1, %v655_v4  ;;  %726 = vst.msk [vmem:[%s1311_s25 + $0x60] sm:$0xff] %vm713_vm1, %v695_v5 }
 0x286   : > { %v954_v7 = vpop.f32.mrb[8].mxu1 }
 0x287   : > { %v710_v8 = vadd.f32 %v954_v7, %v812_v39  ;;  %v704_v9 = vpop.f32.mrb[9].mxu1 }
 0x288   : > { %v705_v10 = vadd.f32 %v812_v39, %v704_v9 }
 0x289   : > { %729 = vst.msk [vmem:[%s1311_s25 + $0x78] sm:$0xff] %vm713_vm1, %v710_v8 }
 0x28a   : > { %728 = vst.msk [vmem:[%s1311_s25 + $0x70] sm:$0xff] %vm713_vm1, %v705_v10 }
 0x28b PF: > { %s15_s18 = sadd.s32 1, %s1057_s18  }
 0x28c   : > { %p12_p4 = scmp.ge.s32.totalorder %s15_s18, 4  }
 0x28e   :  { %14 = sbr.rel (!%p12_p4) target bundleno = 1 (0x1), region = 70 }

</bundles_post_ra>
